<compile_context>
chip_gen: v5e
topology: v5e:2x2
jax: 0.10.0
libtpu: 0.0.40
codegen_flags: <defaults>
</compile_context>

<pallas_src>
import functools

import jax
import jax.numpy as jnp
import numpy as np
from jax.experimental import pallas as pl
from jax.experimental.pallas import tpu as pltpu


def _round_up(x, m):
    return ((x + m - 1) // m) * m


def _cdiv(a, b):
    return (a + b - 1) // b


def _num_tensorcores():
    # v7x has 2 TensorCores per chip; keep >=2 node tiles there.
    try:
        kind = jax.devices()[0].device_kind.lower()
        if "v7" in kind or "7x" in kind:
            return 2
    except Exception:
        pass
    return 1


def _vmem_limit_bytes():
    # Leave ~16 MiB for compiler/internal scratch; cap at 64 MiB (so v7x's
    # 64 MiB physical VMEM resolves to ~48 MiB, v5e/v6e get 64 MiB).
    try:
        cap = int(pltpu.get_tpu_info().vmem_capacity_bytes)
    except Exception:
        cap = 128 * 1024 * 1024
    return max(32 * 1024 * 1024, min(cap - 16 * 1024 * 1024, 64 * 1024 * 1024))


# ----------------------------------------------------------------------------
# Kernel A: fused per-relation (+ self-loop) node feature transform.
#   Zcat[m_block] = feat2d[m_block] @ W_cat,   W_cat : (F_in, (R+1)*F_out)
# ----------------------------------------------------------------------------
def _rel_transform_kernel(x_ref, w_ref, z_ref):
    z_ref[...] = jnp.dot(x_ref[...], w_ref[...],
                         preferred_element_type=jnp.float32).astype(z_ref.dtype)


# ----------------------------------------------------------------------------
# Kernel B: attention-weighted scatter aggregation + bias + self-loop (+ tanh).
#   grid = (node tiles [parallel], edge tiles [arbitrary, reduction])
# ----------------------------------------------------------------------------
def _fam_aggregate_kernel(zg_ref, att_ref, scat_ref, self_ref, bias_ref,
                          expand_ref, out_ref, acc_ref, *, apply_tanh):
    j = pl.program_id(1)

    @pl.when(j == 0)
    def _init():
        acc_ref[...] = jnp.zeros_like(acc_ref)

    # Broadcast attention (tile_e, T) -> (tile_e, T*F_out) with a constant 0/1
    # expand matrix on the MXU (exact; avoids lane-relayout reshapes).
    attw = jnp.dot(att_ref[...], expand_ref[...],
                   preferred_element_type=jnp.float32)          # f32
    # f32 epilogue (v5e VPU has no bf16 ALUs); single cast before the MXU.
    msg = (zg_ref[...].astype(jnp.float32) + bias_ref[...]) * attw

    # Scatter-sum over destinations as one lane-dense MXU matmul.
    acc_ref[...] += jnp.dot(scat_ref[...], msg.astype(scat_ref.dtype),
                            preferred_element_type=jnp.float32)

    @pl.when(j == pl.num_programs(1) - 1)
    def _finish():
        h = acc_ref[...] + self_ref[...].astype(jnp.float32)
        if apply_tanh:
            h = jnp.tanh(h)
        out_ref[...] = h.astype(out_ref.dtype)


# ----------------------------------------------------------------------------
# One Temp_FAM_RelGraphConv layer, operating on padded flattened features.
#   x2d : (Np*T, F_in)   ->   returns (Np, T*F_out)
# ----------------------------------------------------------------------------
def _temp_fam_relgraphconv_padded(x2d, weight, h_bias, loop_weight, expand, *,
                                  src_i, etype_i, att_p, scat_p,
                                  E, T, tile_n, n_node_tiles, tile_e, Ep, Np,
                                  compute_dtype, out_dtype, vmem_limit,
                                  apply_tanh=True):
    R, F_in, F_out = weight.shape
    R1 = R + 1
    TFo = T * F_out
    NpT = Np * T
    cdt = jnp.dtype(compute_dtype)
    cdt_b = cdt.itemsize

    # Kernel A row tile: multiple of the node tile so it divides NpT exactly.
    tile_m = tile_n * T
    while tile_m > 1024 and (tile_m // 2) % 8 == 0:
        tile_m //= 2

    # (R1, F_in, F_out) -> (F_in, R1*F_out): one wide, lane-dense matmul.
    w_cat = jnp.transpose(
        jnp.concatenate([weight, loop_weight[None]], axis=0),
        (1, 0, 2)).reshape(F_in, R1 * F_out).astype(cdt)

    # ----- Kernel A: Zcat = feat2d @ W_cat ---------------------------------
    zcat = pl.pallas_call(
        _rel_transform_kernel,
        out_shape=jax.ShapeDtypeStruct((NpT, R1 * F_out), cdt),
        grid_spec=pltpu.PrefetchScalarGridSpec(
            num_scalar_prefetch=0,
            grid=(NpT // tile_m,),
            in_specs=[pl.BlockSpec((tile_m, F_in), lambda m: (m, 0)),
                      pl.BlockSpec((F_in, R1 * F_out), lambda m: (0, 0))],
            out_specs=pl.BlockSpec((tile_m, R1 * F_out), lambda m: (m, 0)),
        ),
        compiler_params=pltpu.CompilerParams(
            dimension_semantics=("parallel",),
            vmem_limit_bytes=vmem_limit),
        cost_estimate=pl.CostEstimate(
            flops=2 * NpT * F_in * R1 * F_out,
            transcendentals=0,
            bytes_accessed=(NpT * F_in + F_in * R1 * F_out
                            + NpT * R1 * F_out) * cdt_b),
    )(x2d.astype(cdt), w_cat)

    # Recover per-(relation, node) rows for the edge gather (glue only).
    z4 = zcat.reshape(Np, T, R1, F_out)
    zg = z4[src_i, :, etype_i, :].reshape(E, TFo)      # (E, T*F_out)
    self_term = z4[:, :, R, :].reshape(Np, TFo)        # self-loop term
    zg_p = jnp.pad(zg, ((0, Ep - E), (0, 0)))

    bias_flat = jnp.tile(h_bias.astype(jnp.float32), T).reshape(1, TFo)

    # ----- Kernel B: aggregate + bias + self-loop (+ tanh) -----------------
    out2 = pl.pallas_call(
        functools.partial(_fam_aggregate_kernel, apply_tanh=apply_tanh),
        out_shape=jax.ShapeDtypeStruct((Np, TFo), out_dtype),
        grid_spec=pltpu.PrefetchScalarGridSpec(
            num_scalar_prefetch=0,
            grid=(n_node_tiles, Ep // tile_e),
            in_specs=[
                pl.BlockSpec((tile_e, TFo), lambda i, j: (j, 0)),     # zg
                pl.BlockSpec((tile_e, T), lambda i, j: (j, 0)),       # att
                pl.BlockSpec((tile_n, tile_e), lambda i, j: (i, j)),  # scat
                pl.BlockSpec((tile_n, TFo), lambda i, j: (i, 0)),     # self loop
                pl.BlockSpec((1, TFo), lambda i, j: (0, 0)),          # bias (f32)
                pl.BlockSpec((T, TFo), lambda i, j: (0, 0)),          # expand
            ],
            out_specs=pl.BlockSpec((tile_n, TFo), lambda i, j: (i, 0)),
            scratch_shapes=[pltpu.VMEM((tile_n, TFo), jnp.float32)],
        ),
        compiler_params=pltpu.CompilerParams(
            dimension_semantics=("parallel", "arbitrary"),
            vmem_limit_bytes=vmem_limit),
        cost_estimate=pl.CostEstimate(
            flops=2 * Np * Ep * TFo + n_node_tiles * 2 * Ep * T * TFo,
            transcendentals=(Np * TFo if apply_tanh else 0),
            bytes_accessed=(n_node_tiles * (Ep * TFo + Ep * T)
                            + Np * Ep + Np * TFo + T * TFo) * cdt_b
                           + TFo * 4
                           + Np * TFo * jnp.dtype(out_dtype).itemsize),
    )(zg_p, att_p, scat_p, self_term, bias_flat, expand)

    return out2


# ----------------------------------------------------------------------------
# Full Temp_FAM_Rel_GCN forward (attention produced externally; see TODO).
# ----------------------------------------------------------------------------
def temp_fam_rel_gcn(feat, src, dst, etype, attention, params,
                     node_num_pertime, *, compute_dtype=jnp.bfloat16,
                     tile_n=None, tile_e=None):
    (w1, b1, l1), (w2, b2, l2) = params
    N, T, F_in = feat.shape
    E = int(src.shape[0])
    h_dim = w1.shape[-1]
    out_dim = w2.shape[-1]
    cdt = jnp.dtype(compute_dtype)

    # ----- tiling plan shared by both layers -------------------------------
    if tile_n is not None:
        tile_n = _round_up(tile_n, 8)
        Np = _round_up(N, tile_n)
        n_node_tiles = Np // tile_n
    else:
        TFo_max = T * max(h_dim, out_dim)
        n_node_tiles = 2 if (_num_tensorcores() >= 2 and N >= 16) else 1
        # Grow the node-tile count only if the f32 accumulator would not fit
        # a comfortable VMEM budget; otherwise stream zg/att exactly once.
        while (_round_up(_cdiv(N, n_node_tiles), 8) > 8 and
               _round_up(_cdiv(N, n_node_tiles), 8) * TFo_max * 4
               > 8 * 1024 * 1024):
            n_node_tiles *= 2
        tile_n = _round_up(_cdiv(N, n_node_tiles), 8)
        Np = tile_n * n_node_tiles
    if tile_e is None:
        tile_e = _round_up(E, 8) if E <= 1024 else 1024
    Ep = _round_up(E, tile_e)
    vmem_limit = _vmem_limit_bytes()

    # ----- layer-invariant glue, built once --------------------------------
    featp = jnp.pad(feat, ((0, Np - N), (0, 0), (0, 0)))
    x2d = featp.reshape(Np * T, F_in).astype(cdt)
    src_i = src.astype(jnp.int32)
    etype_i = etype.astype(jnp.int32)
    # Dense one-hot destination scatter matrix (exact in bf16).
    # TODO(synk): for very large graphs replace the dense (N, E) scatter matmul
    # with a dst-sorted segment accumulation using scalar-prefetched offsets.
    scat = (dst[None, :] == jnp.arange(N, dtype=dst.dtype)[:, None]).astype(cdt)
    scat_p = jnp.pad(scat, ((0, Np - N), (0, Ep - E)))
    att_p = jnp.pad(attention.reshape(E, T), ((0, Ep - E), (0, 0))).astype(cdt)
    expands = {}
    for fo in (h_dim, out_dim):
        if fo not in expands:
            expands[fo] = jnp.repeat(jnp.eye(T, dtype=cdt), fo, axis=1)

    common = dict(src_i=src_i, etype_i=etype_i, att_p=att_p, scat_p=scat_p,
                  E=E, T=T, tile_n=tile_n, n_node_tiles=n_node_tiles,
                  tile_e=tile_e, Ep=Ep, Np=Np, compute_dtype=cdt,
                  vmem_limit=vmem_limit, apply_tanh=True)

    # ----- two layers; activation stays in padded (Np, T*F) layout ---------
    h2d = _temp_fam_relgraphconv_padded(x2d, w1, b1, l1, expands[h_dim],
                                        out_dtype=cdt, **common)
    x2d2 = h2d.reshape(Np * T, h_dim)                # pure reshape, still padded
    o2d = _temp_fam_relgraphconv_padded(x2d2, w2, b2, l2, expands[out_dim],
                                        out_dtype=feat.dtype, **common)

    x = o2d.reshape(Np, T, out_dim)[:N]              # un-pad exactly once
    # th.split(x, node_num_pertime) -> stack -> mean(dim=0)   (glue)
    chunks = N // node_num_pertime
    return x.reshape(chunks, node_num_pertime, T, out_dim).mean(axis=0)


# ----------------------------------------------------------------------------
# Pure-JAX f32 reference (module semantics).
# ----------------------------------------------------------------------------
def _relgraphconv_ref(feat, src, dst, etype, attention, weight, h_bias,
                      loop_weight):
    m = (jnp.einsum('etf,efg->etg', feat[src], weight[etype]) + h_bias) \
        * attention
    h = jax.ops.segment_sum(m, dst, num_segments=feat.shape[0])
    return h + jnp.einsum('ntf,fg->ntg', feat, loop_weight)


def temp_fam_rel_gcn_ref(feat, src, dst, etype, attention, params,
                         node_num_pertime):
    (w1, b1, l1), (w2, b2, l2) = params
    x = jnp.tanh(_relgraphconv_ref(feat, src, dst, etype, attention, w1, b1, l1))
    x = jnp.tanh(_relgraphconv_ref(x, src, dst, etype, attention, w2, b2, l2))
    chunks = x.shape[0] // node_num_pertime
    return x.reshape(chunks, node_num_pertime, *x.shape[1:]).mean(axis=0)


if __name__ == "__main__":
    # Small, module-consistent shapes.
    node_num_pertime = 8
    n_time_chunks = 2
    N = node_num_pertime * n_time_chunks      # 16 nodes
    E = 256                                   # edges
    T = 8                                     # temporal length per node
    in_dim, h_dim, out_dim, num_rels = 32, 32, 32, 3

    key = jax.random.PRNGKey(0)
    ks = jax.random.split(key, 9)

    feat = jax.random.normal(ks[0], (N, T, in_dim), jnp.float32)
    src = jax.random.randint(ks[1], (E,), 0, N)
    dst = jax.random.randint(ks[2], (E,), 0, N)
    etype = jax.random.randint(ks[3], (E,), 0, num_rels)
    attention = jax.random.uniform(ks[4], (E, T, 1), jnp.float32)

    def xavier(k, shape, fan_in, fan_out):
        gain = 2.0 ** 0.5
        b = gain * (6.0 / (fan_in + fan_out)) ** 0.5
        return jax.random.uniform(k, shape, jnp.float32, -b, b)

    w1 = xavier(ks[5], (num_rels, in_dim, h_dim), in_dim, h_dim)
    l1 = xavier(ks[6], (in_dim, h_dim), in_dim, h_dim)
    b1 = jnp.zeros((h_dim,), jnp.float32)
    w2 = xavier(ks[7], (num_rels, h_dim, out_dim), h_dim, out_dim)
    l2 = xavier(ks[8], (h_dim, out_dim), h_dim, out_dim)
    b2 = jnp.zeros((out_dim,), jnp.float32)
    params = ((w1, b1, l1), (w2, b2, l2))

    ref = temp_fam_rel_gcn_ref(feat, src, dst, etype, attention, params,
                               node_num_pertime)

    # f32 path with forced multi-tile grids: strict check against reference.
    out_f32 = temp_fam_rel_gcn(feat, src, dst, etype, attention, params,
                               node_num_pertime, compute_dtype=jnp.float32,
                               tile_n=8, tile_e=128)
    out_f32 = jax.block_until_ready(out_f32)
    assert out_f32.shape == (node_num_pertime, T, out_dim)
    np.testing.assert_allclose(np.asarray(out_f32), np.asarray(ref),
                               rtol=2e-2, atol=2e-2)

    # bf16 fast path with default tiling (collapsed node axis, single edge
    # tile): sanity check against the f32 reference (loose tolerance: two
    # stacked bf16 layers).
    out_bf16 = temp_fam_rel_gcn(feat, src, dst, etype, attention, params,
                                node_num_pertime, compute_dtype=jnp.bfloat16)
    out_bf16 = jax.block_until_ready(out_bf16)
    err = float(jnp.max(jnp.abs(out_bf16.astype(jnp.float32) - ref)))
    assert err < 2.5e-1, f"bf16 path max abs error too large: {err}"

    print("KERNEL_OK")
</pallas_src>

<mosaic_0001>
module attributes {stable_mosaic.version = 11 : i64} {
  func.func @_rel_transform_kernel(%arg0: i32, %arg1: memref<64x32xf32, #tpu.memory_space<vmem>>, %arg2: memref<32x128xf32, #tpu.memory_space<vmem>>, %arg3: memref<64x128xf32, #tpu.memory_space<vmem>>) attributes {dimension_semantics = [#tpu.dimension_semantics<parallel>], iteration_bounds = array<i64: 2>, scalar_prefetch = 0 : i64, scratch_operands = 0 : i64, tpu.core_type = #tpu.core_type<tc>, window_params = [{transform_indices = @transform_0, window_bounds = array<i64: 64, 32>}, {pipeline_mode = #tpu.pipeline_mode<synchronous>, transform_indices = @transform_1, window_bounds = array<i64: 32, 128>}, {transform_indices = @transform_2, window_bounds = array<i64: 64, 128>}]} {
    %c0 = arith.constant 0 : index
    %c0_0 = arith.constant 0 : index
    %0 = vector.load %arg1[%c0, %c0_0] : memref<64x32xf32, #tpu.memory_space<vmem>>, vector<64x32xf32>
    %c0_1 = arith.constant 0 : index
    %c0_2 = arith.constant 0 : index
    %1 = vector.load %arg2[%c0_1, %c0_2] : memref<32x128xf32, #tpu.memory_space<vmem>>, vector<32x128xf32>
    %cst = arith.constant dense<0.000000e+00> : vector<64x128xf32>
    %2 = tpu.matmul %0, %1, %cst {dimension_numbers = #tpu.dot_dimension_numbers<[1], [0], [0], [1], [0, 0, 1, 1], [], []>} : vector<64x32xf32>, vector<32x128xf32>, vector<64x128xf32> -> vector<64x128xf32>
    %c0_3 = arith.constant 0 : index
    %c0_4 = arith.constant 0 : index
    %3 = vector.load %arg3[%c0_3, %c0_4] : memref<64x128xf32, #tpu.memory_space<vmem>>, vector<64x128xf32>
    tpu.vector_store %arg3[%c0_3, %c0_4], %2 {strides = array<i32>} : memref<64x128xf32, #tpu.memory_space<vmem>>, vector<64x128xf32>,
    return
  }
  func.func @transform_0(%arg0: i32) -> (i32, i32) {
    %c0_i32 = arith.constant 0 : i32
    %c0_i32_0 = arith.constant 0 : i32
    return %arg0, %c0_i32 : i32, i32
  }
  func.func @transform_1(%arg0: i32) -> (i32, i32) {
    %c0_i32 = arith.constant 0 : i32
    %c0_i32_0 = arith.constant 0 : i32
    %c0_i32_1 = arith.constant 0 : i32
    return %c0_i32, %c0_i32_0 : i32, i32
  }
  func.func @transform_2(%arg0: i32) -> (i32, i32) {
    %c0_i32 = arith.constant 0 : i32
    %c0_i32_0 = arith.constant 0 : i32
    return %arg0, %c0_i32 : i32, i32
  }
}

</mosaic_0001>

<bundles_post_ra>
// kernel: tpu_custom_call.1
= control target key start
LH: loop header
LB: loop body
LE: loop exit
PB: predicated region body
PF: predicated region fallthrough
CT: control target
= control target key end

     0   :  { %7 = vsyncpa [#allocation3], 0  ;;  %s568_s0 = inlined_call_operand.vmem [shape: f32[128,32], index: 0, kind: input, shape index: {}]   ;;  %s569_s1 = inlined_call_operand.vmem [shape: f32[32,128], index: 1, kind: input, shape index: {}]   ;;  %s570_s2 = inlined_call_operand.hbm [shape: f32[128,128], index: 2, kind: output, shape index: {}]  }
   0x1   :  { %9 = vsyncpa [#allocation3 + $0x1], 0  ;;  %s464_s9 = smov 0   ;;  %s466_s10 = smov 0  }
   0x2   :  { %s468_s11 = smov 0   ;;  %s470_s12 = smov 0  }
   0x3 LB: > { %s485_s13 = sadd.s32 4294967295, %s445_s12   ;;  %s309_s14 = sadd.s32 4294967294, %s445_s12   ;;  %s445_s12 = sphi %s470_s12, %s576_s12   ;;  %s441_s11 = sphi %s468_s11, %s575_s11   ;;  %s437_s10 = sphi %s466_s10, %s574_s10   ;;  %s433_s9 = sphi %s464_s9, %s573_s9  }
   0x4   : > { %s489_s15 = sadd.s32 1, %s445_s12   ;;  %s69_s16 = sadd.s32 1, %s441_s11 }
   0x5   : > { %s66_s17 = ssub.s32 %s445_s12, %s489_s15  ;;  %p79_p0 = scmp.ne.s32.totalorder %s441_s11, %s437_s10 }
   0x6   : > { %p67_p1 = scmp.eq.s32.totalorder %s66_s17, 0  ;;  %p80_p2 = scmp.eq.s32.totalorder %s485_s13, 1 }
   0x7   : > { %p85_p3 = scmp.ne.s32.totalorder %s437_s10, %s433_s9  ;;  %p86_p4 = scmp.eq.s32.totalorder %s309_s14, 1 }
   0x8   : > { %s500_s18 = scalar_select %p67_p1, %s441_s11, %s69_s16  }
   0x9   : > { %p502_p5 = por %p80_p2, %p79_p0  ;;  %p506_p6 = por %p86_p4, %p85_p3 }
   0xa   : > { %p312_p7 = scmp.ge.s32.totalorder %s445_s12, 1  ;;  %p116_p8 = scmp.lt.s32.totalorder %s445_s12, 3 }
   0xc   : > { %p117_p9 = pnand %p312_p7, %p116_p8 }
   0xd   : > { %s314_s25 = sshll.u32 (!%p117_p9), %s485_s13, 3  ;;  %s135_s6 = sand.u32 (!%p117_p9), 1, %s437_s10  }
   0xe   : > { %120 = sbr.rel (%p117_p9) target bundleno = 172 (0xac), region = 28  ;;  %p139_p10 = scmp.lt.s32.totalorder (!%p117_p9), %s314_s25, 15 }
   0xf   : > { %s313_s7 = sshll.u32 (!%p117_p9), %s135_s6, 6  ;;  %s329_s14 = sshll.u32 (!%p117_p9), %s485_s13, 6 }
  0x10   : > { %s137_s8 = scalar_lea.vmem (!%p117_p9), [#allocation2], %s313_s7  ;;  %s243_s21 = scalar_lea.hbm (!%p117_p9), %s570_s2, %s329_s14 }
  0x11   : > { %s244_s22 = sshll.u32 (!%p117_p9), %s137_s8, 4  ;;  %s246_s23 = sshll.u32 (!%p117_p9), %s243_s21, 4  ;;  %s245_s22 = int_to_ptr.vmem [resolvable:$true] %s244_s22  ;;  %s247_s23 = int_to_ptr.hbm [resolvable:$true] %s246_s23 }
  0x12   : > { %s232_s13 = scalar_lea.sflag (!%p117_p9), [#allocation3], %s135_s6  ;;  %s397_s24 = sshra.s32 (!%p117_p9), %s247_s23, 4  ;;  %s398_s24 = int_to_ptr.hbm [resolvable:$true] %s397_s24 }
  0x13   : > { %v156_v0 = vld [vmem:[%s569_s1 + $0x18] sm:$0xff]  ;;  %v155_v1 = vld [vmem:[%s569_s1 + $0x10] sm:$0xff]  ;;  %v154_v2 = vld [vmem:[%s569_s1 + $0x8] sm:$0xff]  ;;  %s578_s25 = smov (!%p139_p10, %s314_s25), 15  ;;  %vm157_vm0 = vcmask 261120   ;;  %s403_s28 = scalar_lea.hbm %s570_s2, 128 }
  0x14   : > { %331 = vmatpush.msra.mxu2 %v156_v0  ;;  %332 = vmatpush.msra.mxu3 %v156_v0  ;;  %v153_v3 = vld [vmem:[%s569_s1] sm:$0xff]  ;;  %s315_s30 = sshll.u32 %s578_s25, 3  ;;  %s399_s25 = scalar_lea.hbm %s398_s24, 64 }
  0x15   : > { %194 = vmatpush.msra.mxu0 %v156_v0  ;;  %330 = vmatpush.msra.mxu1 %v156_v0  ;;  %s142_s5 = scalar_lea.vmem %s568_s0, %s315_s30  ;;  %p400_p11 = scmp.ne.s32.totalorder %s398_s24, %s399_s25 }
  0x16   : > { %334 = vmatpush.msra.mxu2 %v155_v1  ;;  %335 = vmatpush.msra.mxu3 %v155_v1  ;;  %v149_v4 = vld [vmem:[%s142_s5 + $0x20] sm:$0xff]  ;;  %v151_v5 = vld [vmem:[%s142_s5 + $0x30] sm:$0xff]  ;;  %v150_v8 = vld [vmem:[%s142_s5 + $0x28] sm:$0xff]  ;;  %p404_p0 = scmp.lt.s32.totalorder %s398_s24, %s570_s2  ;;  %p405_p1 = scmp.lt.s32.totalorder %s403_s28, %s399_s25 }
  0x17   : > { %195 = vmatpush.msra.mxu0 %v155_v1  ;;  %333 = vmatpush.msra.mxu1 %v155_v1  ;;  %v145_v6 = vld [vmem:[%s142_s5] sm:$0xff]  ;;  %v147_v7 = vld [vmem:[%s142_s5 + $0x10] sm:$0xff]  ;;  %v152_v9 = vld [vmem:[%s142_s5 + $0x38] sm:$0xff]  ;;  %p401_p12 = pnand %p400_p11, %p502_p5 }
  0x18   : > { %337 = vmatpush.msra.mxu2 %v154_v2  ;;  %338 = vmatpush.msra.mxu3 %v154_v2  ;;  %v146_v10 = vld [vmem:[%s142_s5 + $0x8] sm:$0xff]  ;;  %v148_v11 = vld [vmem:[%s142_s5 + $0x18] sm:$0xff]  ;;  %p406_p2 = por %p405_p1, %p404_p0 }
  0x19   : > { %196 = vmatpush.msra.mxu0 %v154_v2  ;;  %336 = vmatpush.msra.mxu1 %v154_v2  ;;  %p402_p13 = pneg %p401_p12 }
  0x1a   : > { %340 = vmatpush.msra.mxu2 %v153_v3  ;;  %341 = vmatpush.msra.mxu3 %v153_v3 }
  0x1b   : > { %320 = vmatmul.msk.f32.vlgmr.msra.gmra.mxu2 %vm157_vm0, %v149_v4  ;;  %322 = vmatmul.msk.f32.vlgmr.msra.gmra.mxu3 %vm157_vm0, %v151_v5  ;;  %p407_p3 = pnand %p406_p2, %p402_p13 }
  0x1c   : > { %197 = vmatpush.msra.mxu0 %v153_v3  ;;  %339 = vmatpush.msra.mxu1 %v153_v3 }
  0x1d   : > { %316 = vmatmul.msk.f32.vlgmr.msra.gmra.mxu0 %vm157_vm0, %v145_v6  ;;  %318 = vmatmul.msk.f32.vlgmr.msra.gmra.mxu1 %vm157_vm0, %v147_v7 }
  0x23   : > { %321 = vmatmul.msk.f32.gmra.mxu2 %vm157_vm0, %v150_v8  ;;  %323 = vmatmul.msk.f32.gmra.mxu3 %vm157_vm0, %v152_v9 }
  0x25   : > { %317 = vmatmul.msk.f32.gmra.mxu0 %vm157_vm0, %v146_v10  ;;  %319 = vmatmul.msk.f32.gmra.mxu1 %vm157_vm0, %v148_v11 }
  0x9a   : > { %v199_v12 = vpop.f32.mrf.mxu0  ;;  %v205_v13 = vpop.f32.mrf.mxu1 }
  0x9b   : > { %223 = vst [vmem:[%s137_s8] sm:$0xff] %v199_v12 }
  0x9c   : > { %225 = vst [vmem:[%s137_s8 + $0x10] sm:$0xff] %v205_v13 }
  0x9e   : > { %v211_v14 = vpop.f32.mrf.mxu2  ;;  %v217_v15 = vpop.f32.mrf.mxu3 }
  0x9f   : > { %227 = vst [vmem:[%s137_s8 + $0x20] sm:$0xff] %v211_v14 }
  0xa0   : > { %229 = vst [vmem:[%s137_s8 + $0x30] sm:$0xff] %v217_v15 }
  0xa2   : > { %v202_v16 = vpop.f32.mrf.mxu0  ;;  %v208_v17 = vpop.f32.mrf.mxu1 }
  0xa3   : > { %224 = vst [vmem:[%s137_s8 + $0x8] sm:$0xff] %v202_v16 }
  0xa4   : > { %226 = vst [vmem:[%s137_s8 + $0x18] sm:$0xff] %v208_v17 }
  0xa6   : > { %v214_v18 = vpop.f32.mrf.mxu2  ;;  %v220_v19 = vpop.f32.mrf.mxu3 }
  0xa7   : > { %228 = vst [vmem:[%s137_s8 + $0x28] sm:$0xff] %v214_v18 }
  0xa8   : > { %230 = vst [vmem:[%s137_s8 + $0x38] sm:$0xff] %v220_v19 }
  0xa9   : > { %410 = shalt.err (!%p407_p3)
}
  0xaa   : > { %s447_s3 = smov 128   ;;  %s448_s4 = smov 8  }
  0xab   : > { %342 = dma.vmem_to_hbm [thread:$0]  (%p502_p5), %s245_s22, 1024, %s247_s23, %s232_s13, %s447_s3, %s447_s3, %s448_s4  }
  0xac PF: > { %p348_p4 = scmp.ge.s32.totalorder %s445_s12, 2  ;;  %s261_s5 = sand.u32 1, %s433_s9  }
  0xad   : > { %s262_s6 = scalar_lea.sflag [#allocation3], %s261_s5 }
  0xae   : > { %p345_p7 = pnand %p348_p4, %p506_p6 }
  0xb0   : > { %p346_p8 = pneg %p345_p7 }
  0xb2   : > { %428 = dma.done.wait (%p346_p8), %s262_s6, 1024  }
  0xb3   : > { %430 = vsyncadd (%p346_p8), %s262_s6, 4294966272  ;;  %p12_p9 = scmp.ge.s32.totalorder %s489_s15, 4   ;;  %s573_s9 = smov %s437_s10 }
  0xb4   : > { %s574_s10 = smov %s441_s11  ;;  %s575_s11 = smov %s500_s18 }
  0xb5   : > { %s576_s12 = smov %s489_s15  ;;  %14 = sbr.rel (!%p12_p9) target bundleno = 3 (0x3), region = 63 }
  0xba   :  { %268 = vsyncpa [#allocation3], 1 }
  0xbb   :  { %270 = vsyncpa [#allocation3 + $0x1], 1 }

</bundles_post_ra>
